<compile_context>
chip_gen: v7x
topology: tpu7x:2x2x1
jax: 0.10.0
libtpu: 0.0.40
codegen_flags: <defaults>
</compile_context>

<pallas_src>
import math

import jax
import jax.numpy as jnp
import numpy as np
from jax import lax
from jax.experimental import pallas as pl
from jax.experimental.pallas import tpu as pltpu

_P = 2
_T1_CONST = math.gamma(_P / 2 + 0.5) / math.pi ** 0.5   # Gamma(1.5)/sqrt(pi)
_BR_SCALE = 2.0 * _T1_CONST                             # == 1.0 up to float rounding


# --- small helpers -----------------------------------------------------------
def _round_up(x, m):
    return ((x + m - 1) // m) * m


def _device_kind():
    try:
        return jax.devices()[0].device_kind.lower()
    except Exception:
        return ""


def _is_v7():
    k = _device_kind()
    return ("v7" in k) or ("tpu7" in k) or ("tpu 7" in k)


def _default_block_rows():
    # v7x: ~3.2 TB/s per TC makes the ~0.35us/step cost significant; 1024x512xf32 tiles
    # (5 inputs x 2 bufs = 20 MiB) still fit the 32 MiB default scoped-VMEM budget.
    # v5e/v6e: keep 512 (10 MiB double-buffered) inside v5e's 16 MiB default budget.
    return 1024 if _is_v7() else 512


def _dimension_semantics():
    # On v7x make sure the grid axis actually shards across the 2 TensorCores.
    if _is_v7():
        try:
            return (pltpu.CORE_PARALLEL,)
        except AttributeError:
            pass
    return ("parallel",)


# --- kernel ------------------------------------------------------------------
def _make_kernel(total, tm, lanes, needs_mask, unroll):
    n_strips = tm // 8

    def kernel(alpha_ref, beta_ref, gamma_ref, nu_ref, y_ref, br_ref, reg_ref):
        blk = pl.program_id(0)
        if needs_mask:
            # flat offset of each (sublane, lane) element within one 8-row strip
            offs = (lax.broadcasted_iota(jnp.int32, (8, lanes), 0) * lanes
                    + lax.broadcasted_iota(jnp.int32, (8, lanes), 1))

        def strip(j, carry):
            br_acc, reg_acc = carry
            r = pl.ds(pl.multiple_of(j * 8, 8), 8)
            # native-dtype loads, upcast on the VPU
            alpha = alpha_ref[r, :].astype(jnp.float32)
            beta = beta_ref[r, :].astype(jnp.float32)
            gamma = gamma_ref[r, :].astype(jnp.float32)
            nu = nu_ref[r, :].astype(jnp.float32)
            y = y_ref[r, :].astype(jnp.float32)

            d = y - gamma
            d2 = d * d
            # closed form of t1*t2*t3 / (2*C) for p = 2 (Gamma(a) = (a-1)*Gamma(a-1));
            # the divide goes to the EUP so the VALU keeps its slack on v7x.
            inv = pl.reciprocal(nu * (alpha - 1.0), approx=True)
            br_t = beta * inv + d2
            reg_t = jnp.abs(d) * (2.0 * nu + alpha)

            if needs_mask:
                # mask the ragged tail: grid-boundary rows read past the array plus, in
                # the misaligned case, the zero-padded lanes of the last row.
                # (int32 flat index: fine for < 2^31 elements.)
                rem = total - (blk * tm + j * 8) * lanes
                valid = offs < rem
                br_t = jnp.where(valid, br_t, 0.0)
                reg_t = jnp.where(valid, reg_t, 0.0)

            return br_acc + br_t, reg_acc + reg_t

        zero = jnp.zeros((8, lanes), jnp.float32)
        br_p, reg_p = lax.fori_loop(0, n_strips, strip, (zero, zero), unroll=unroll)
        br_ref[...] = br_p
        reg_ref[...] = reg_p

    return kernel


# --- wrapper -----------------------------------------------------------------
def edl_criterion(alpha, beta, gamma, nu, y, *, lanes=512, block_rows=None):
    """Returns (loss0, reg) float32 scalars matching EDL_Criterion.forward (p=2)."""
    assert alpha.shape == beta.shape == gamma.shape == nu.shape == y.shape
    assert lanes % 128 == 0
    total = int(np.prod(alpha.shape))
    assert total > 0

    if block_rows is None:
        block_rows = _default_block_rows()

    # Pick the widest lane count (multiple of 128, <= requested) that divides `total`
    # so the flat -> (rows, lanes) reshape is a free bitcast (zero-copy fast path).
    lanes_eff, scale, found = lanes, 1, False
    cand, s = lanes, 1
    while cand >= 128:
        if total % cand == 0:
            lanes_eff, scale, found = cand, s, True
            break
        cand //= 2
        s *= 2
    block_rows_eff = block_rows * scale if found else block_rows  # keep tile bytes ~const

    rows = -(-total // lanes_eff)
    pad = rows * lanes_eff - total          # < lanes_eff; 0 on the zero-copy fast path

    tm = _round_up(min(block_rows_eff, _round_up(rows, 8)), 8)
    num_blocks = -(-rows // tm)
    needs_mask = (num_blocks * tm * lanes_eff) != total

    n_strips = tm // 8
    unroll = max(d for d in (8, 4, 2, 1) if n_strips % d == 0)

    def prep(x):
        flat = jnp.ravel(x)                       # free for contiguous inputs; keeps dtype
        if pad:
            # misaligned-total fallback only: one small pad (copy); values masked in-kernel
            flat = jnp.pad(flat, (0, pad))
        return flat.reshape(rows, lanes_eff)      # free when pad == 0

    inputs = [prep(v) for v in (alpha, beta, gamma, nu, y)]

    in_specs = [pl.BlockSpec((tm, lanes_eff), lambda i: (i, 0)) for _ in inputs]
    out_spec = pl.BlockSpec((8, lanes_eff), lambda i: (i, 0))

    in_bytes = sum(int(np.prod(v.shape)) * v.dtype.itemsize for v in inputs)
    out_bytes = 2 * num_blocks * 8 * lanes_eff * 4

    br_parts, reg_parts = pl.pallas_call(
        _make_kernel(total, tm, lanes_eff, needs_mask, unroll),
        grid=(num_blocks,),
        in_specs=in_specs,
        out_specs=(out_spec, out_spec),
        out_shape=(
            jax.ShapeDtypeStruct((num_blocks * 8, lanes_eff), jnp.float32),
            jax.ShapeDtypeStruct((num_blocks * 8, lanes_eff), jnp.float32),
        ),
        compiler_params=pltpu.CompilerParams(
            dimension_semantics=_dimension_semantics()),
        cost_estimate=pl.CostEstimate(
            flops=13 * total, transcendentals=total,
            bytes_accessed=in_bytes + out_bytes),
    )(*inputs)

    inv_n = jnp.float32(1.0 / total)
    loss0 = jnp.float32(_BR_SCALE) * jnp.sum(br_parts) * inv_n
    reg = jnp.sum(reg_parts) * inv_n
    return loss0, reg


# --- pure-JAX reference (literal transcription of the torch module, p = 2) ----
def _reference(alpha, beta, gamma, nu, y):
    lg = lax.lgamma
    d2 = (y - gamma) ** 2
    t1 = _T1_CONST / jnp.exp(lg(alpha))
    t2 = 2.0 * beta / nu
    t3 = jnp.exp(lg(alpha - 1.0)) + (-1.0) * (jnp.exp(lg(alpha)) / 2.0) * (-2.0 * d2 * nu / beta)
    br = jnp.mean(t1 * t2 * t3)
    reg = jnp.mean(jnp.abs(y - gamma) * (2.0 * nu + alpha))
    return br, reg


if __name__ == "__main__":
    key = jax.random.PRNGKey(0)

    def make_inputs(k, shape):
        k1, k2, k3, k4, k5 = jax.random.split(k, 5)
        # alpha > 1.5 so Gamma(alpha - 1) is well defined (required by the reference loss)
        alpha = jax.random.uniform(k1, shape, jnp.float32, 1.5, 4.0)
        beta = jax.random.uniform(k2, shape, jnp.float32, 0.5, 2.0)
        gamma = jax.random.normal(k3, shape, jnp.float32)
        nu = jax.random.uniform(k4, shape, jnp.float32, 0.5, 2.0)
        y = jax.random.normal(k5, shape, jnp.float32)
        return alpha, beta, gamma, nu, y

    k_a, k_b = jax.random.split(key)

    # case 1: small (N, D) evidential head output; total % 512 == 0 -> zero-copy fast path
    inputs1 = make_inputs(k_a, (64, 128))
    out1 = jax.block_until_ready(edl_criterion(*inputs1))
    ref1 = _reference(*inputs1)

    # case 2: odd shape + tiny tiles -> misaligned total, multi-block grid, in-kernel mask
    inputs2 = make_inputs(k_b, (37, 50))
    out2 = jax.block_until_ready(edl_criterion(*inputs2, lanes=128, block_rows=8))
    ref2 = _reference(*inputs2)

    for (lo, rg), (lo_r, rg_r) in ((out1, ref1), (out2, ref2)):
        np.testing.assert_allclose(np.asarray(lo), np.asarray(lo_r), rtol=5e-3, atol=1e-5)
        np.testing.assert_allclose(np.asarray(rg), np.asarray(rg_r), rtol=1e-4, atol=1e-5)

    print("KERNEL_OK")
</pallas_src>

<mosaic_0001>
module attributes {stable_mosaic.version = 11 : i64} {
  func.func @kernel(%arg0: i32, %arg1: memref<16x512xf32, #tpu.memory_space<vmem>>, %arg2: memref<16x512xf32, #tpu.memory_space<vmem>>, %arg3: memref<16x512xf32, #tpu.memory_space<vmem>>, %arg4: memref<16x512xf32, #tpu.memory_space<vmem>>, %arg5: memref<16x512xf32, #tpu.memory_space<vmem>>, %arg6: memref<8x512xf32, #tpu.memory_space<vmem>>, %arg7: memref<8x512xf32, #tpu.memory_space<vmem>>) attributes {dimension_semantics = [#tpu.dimension_semantics<parallel>], iteration_bounds = array<i64: 1>, scalar_prefetch = 0 : i64, scratch_operands = 0 : i64, tpu.core_type = #tpu.core_type<tc>, window_params = [{transform_indices = @transform_0, window_bounds = array<i64: 16, 512>}, {transform_indices = @transform_1, window_bounds = array<i64: 16, 512>}, {transform_indices = @transform_2, window_bounds = array<i64: 16, 512>}, {transform_indices = @transform_3, window_bounds = array<i64: 16, 512>}, {transform_indices = @transform_4, window_bounds = array<i64: 16, 512>}, {transform_indices = @transform_5, window_bounds = array<i64: 8, 512>}, {transform_indices = @transform_6, window_bounds = array<i64: 8, 512>}]} {
    %cst = arith.constant 0.000000e+00 : f32
    %0 = vector.broadcast %cst : f32 to vector<8x512xf32>
    %c0_i32 = arith.constant 0 : i32
    %c8_i32 = arith.constant 8 : i32
    %1 = arith.muli %c0_i32, %c8_i32 : i32
    %2 = tpu.assume_multiple %1, 8 : i32
    %3 = arith.index_cast %2 : i32 to index
    %c0 = arith.constant 0 : index
    %4 = vector.load %arg1[%3, %c0] : memref<16x512xf32, #tpu.memory_space<vmem>>, vector<8x512xf32>
    %5 = arith.index_cast %2 : i32 to index
    %c0_0 = arith.constant 0 : index
    %6 = vector.load %arg2[%5, %c0_0] : memref<16x512xf32, #tpu.memory_space<vmem>>, vector<8x512xf32>
    %7 = arith.index_cast %2 : i32 to index
    %c0_1 = arith.constant 0 : index
    %8 = vector.load %arg3[%7, %c0_1] : memref<16x512xf32, #tpu.memory_space<vmem>>, vector<8x512xf32>
    %9 = arith.index_cast %2 : i32 to index
    %c0_2 = arith.constant 0 : index
    %10 = vector.load %arg4[%9, %c0_2] : memref<16x512xf32, #tpu.memory_space<vmem>>, vector<8x512xf32>
    %11 = arith.index_cast %2 : i32 to index
    %c0_3 = arith.constant 0 : index
    %12 = vector.load %arg5[%11, %c0_3] : memref<16x512xf32, #tpu.memory_space<vmem>>, vector<8x512xf32>
    %13 = arith.subf %12, %8 : vector<8x512xf32>
    %14 = arith.mulf %13, %13 : vector<8x512xf32>
    %cst_4 = arith.constant 1.000000e+00 : f32
    %15 = vector.broadcast %cst_4 : f32 to vector<8x512xf32>
    %16 = arith.subf %4, %15 : vector<8x512xf32>
    %17 = arith.mulf %10, %16 : vector<8x512xf32>
    %18 = tpu.reciprocal %17 {approx = true} : vector<8x512xf32> -> vector<8x512xf32>
    %19 = arith.mulf %6, %18 : vector<8x512xf32>
    %20 = arith.addf %19, %14 : vector<8x512xf32>
    %21 = math.absf %13 : vector<8x512xf32>
    %cst_5 = arith.constant 2.000000e+00 : f32
    %22 = vector.broadcast %cst_5 : f32 to vector<8x512xf32>
    %23 = arith.mulf %22, %10 : vector<8x512xf32>
    %24 = arith.addf %23, %4 : vector<8x512xf32>
    %25 = arith.mulf %21, %24 : vector<8x512xf32>
    %26 = arith.addf %0, %20 : vector<8x512xf32>
    %27 = arith.addf %0, %25 : vector<8x512xf32>
    %c1_i32 = arith.constant 1 : i32
    %c8_i32_6 = arith.constant 8 : i32
    %28 = arith.muli %c1_i32, %c8_i32_6 : i32
    %29 = tpu.assume_multiple %28, 8 : i32
    %30 = arith.index_cast %29 : i32 to index
    %c0_7 = arith.constant 0 : index
    %31 = vector.load %arg1[%30, %c0_7] : memref<16x512xf32, #tpu.memory_space<vmem>>, vector<8x512xf32>
    %32 = arith.index_cast %29 : i32 to index
    %c0_8 = arith.constant 0 : index
    %33 = vector.load %arg2[%32, %c0_8] : memref<16x512xf32, #tpu.memory_space<vmem>>, vector<8x512xf32>
    %34 = arith.index_cast %29 : i32 to index
    %c0_9 = arith.constant 0 : index
    %35 = vector.load %arg3[%34, %c0_9] : memref<16x512xf32, #tpu.memory_space<vmem>>, vector<8x512xf32>
    %36 = arith.index_cast %29 : i32 to index
    %c0_10 = arith.constant 0 : index
    %37 = vector.load %arg4[%36, %c0_10] : memref<16x512xf32, #tpu.memory_space<vmem>>, vector<8x512xf32>
    %38 = arith.index_cast %29 : i32 to index
    %c0_11 = arith.constant 0 : index
    %39 = vector.load %arg5[%38, %c0_11] : memref<16x512xf32, #tpu.memory_space<vmem>>, vector<8x512xf32>
    %40 = arith.subf %39, %35 : vector<8x512xf32>
    %41 = arith.mulf %40, %40 : vector<8x512xf32>
    %cst_12 = arith.constant 1.000000e+00 : f32
    %42 = vector.broadcast %cst_12 : f32 to vector<8x512xf32>
    %43 = arith.subf %31, %42 : vector<8x512xf32>
    %44 = arith.mulf %37, %43 : vector<8x512xf32>
    %45 = tpu.reciprocal %44 {approx = true} : vector<8x512xf32> -> vector<8x512xf32>
    %46 = arith.mulf %33, %45 : vector<8x512xf32>
    %47 = arith.addf %46, %41 : vector<8x512xf32>
    %48 = math.absf %40 : vector<8x512xf32>
    %cst_13 = arith.constant 2.000000e+00 : f32
    %49 = vector.broadcast %cst_13 : f32 to vector<8x512xf32>
    %50 = arith.mulf %49, %37 : vector<8x512xf32>
    %51 = arith.addf %50, %31 : vector<8x512xf32>
    %52 = arith.mulf %48, %51 : vector<8x512xf32>
    %53 = arith.addf %26, %47 : vector<8x512xf32>
    %54 = arith.addf %27, %52 : vector<8x512xf32>
    %c2_i32 = arith.constant 2 : i32
    %c0_14 = arith.constant 0 : index
    %c0_15 = arith.constant 0 : index
    %55 = vector.load %arg6[%c0_14, %c0_15] : memref<8x512xf32, #tpu.memory_space<vmem>>, vector<8x512xf32>
    tpu.vector_store %arg6[%c0_14, %c0_15], %53 {strides = array<i32>} : memref<8x512xf32, #tpu.memory_space<vmem>>, vector<8x512xf32>,
    %c0_16 = arith.constant 0 : index
    %c0_17 = arith.constant 0 : index
    %56 = vector.load %arg7[%c0_16, %c0_17] : memref<8x512xf32, #tpu.memory_space<vmem>>, vector<8x512xf32>
    tpu.vector_store %arg7[%c0_16, %c0_17], %54 {strides = array<i32>} : memref<8x512xf32, #tpu.memory_space<vmem>>, vector<8x512xf32>,
    return
  }
  func.func @transform_0(%arg0: i32) -> (i32, i32) {
    %c0_i32 = arith.constant 0 : i32
    %c0_i32_0 = arith.constant 0 : i32
    return %arg0, %c0_i32 : i32, i32
  }
  func.func @transform_1(%arg0: i32) -> (i32, i32) {
    %c0_i32 = arith.constant 0 : i32
    %c0_i32_0 = arith.constant 0 : i32
    return %arg0, %c0_i32 : i32, i32
  }
  func.func @transform_2(%arg0: i32) -> (i32, i32) {
    %c0_i32 = arith.constant 0 : i32
    %c0_i32_0 = arith.constant 0 : i32
    return %arg0, %c0_i32 : i32, i32
  }
  func.func @transform_3(%arg0: i32) -> (i32, i32) {
    %c0_i32 = arith.constant 0 : i32
    %c0_i32_0 = arith.constant 0 : i32
    return %arg0, %c0_i32 : i32, i32
  }
  func.func @transform_4(%arg0: i32) -> (i32, i32) {
    %c0_i32 = arith.constant 0 : i32
    %c0_i32_0 = arith.constant 0 : i32
    return %arg0, %c0_i32 : i32, i32
  }
  func.func @transform_5(%arg0: i32) -> (i32, i32) {
    %c0_i32 = arith.constant 0 : i32
    %c0_i32_0 = arith.constant 0 : i32
    return %arg0, %c0_i32 : i32, i32
  }
  func.func @transform_6(%arg0: i32) -> (i32, i32) {
    %c0_i32 = arith.constant 0 : i32
    %c0_i32_0 = arith.constant 0 : i32
    return %arg0, %c0_i32 : i32, i32
  }
}

</mosaic_0001>

<bundles_post_ra>
// kernel: tpu_custom_call.1
= control target key start
LH: loop header
LB: loop body
LE: loop exit
PB: predicated region body
PF: predicated region fallthrough
CT: control target
= control target key end

     0   :  { %12 = vsyncpa [#allocation3], 0  ;;  %s692_s0 = inlined_call_operand.hbm [shape: f32[16,512], index: 0, kind: input, shape index: {}]   ;;  %s693_s1 = inlined_call_operand.hbm [shape: f32[16,512], index: 1, kind: input, shape index: {}]   ;;  %s694_s2 = inlined_call_operand.hbm [shape: f32[16,512], index: 2, kind: input, shape index: {}]   ;;  %s695_s3 = inlined_call_operand.hbm [shape: f32[16,512], index: 3, kind: input, shape index: {}]   ;;  %s696_s4 = inlined_call_operand.hbm [shape: f32[16,512], index: 4, kind: input, shape index: {}]   ;;  %s697_s5 = inlined_call_operand.hbm [shape: f32[8,512], index: 5, kind: output, shape index: {0}]   ;;  %s698_s6 = inlined_call_operand.hbm [shape: f32[8,512], index: 6, kind: output, shape index: {1}]  }
   0x1   :  { %13 = vsyncpa [#allocation6], 0 }
   0x2   :  { %14 = vsyncpa [#allocation9], 0 }
   0x3   :  { %15 = vsyncpa [#allocation4], 0 }
   0x4   :  { %16 = vsyncpa [#allocation13], 0  ;;  %s499_s21 = smov [#allocation5]   ;;  %s500_s23 = smov [#allocation8]  }
   0x5   :  { %s34_s22 = sshll.u32 %s499_s21, 4  ;;  %s58_s24 = sshll.u32 %s500_s23, 4  ;;  %s35_s22 = int_to_ptr.vmem [resolvable:$true] %s34_s22  ;;  %s543_s24 = int_to_ptr.vmem [resolvable:$true] %s58_s24 }
   0x6   :  { %s335_s27 = scalar_lea.hbm %s693_s1, 1024 }
   0x7   :  { %p336_p0 = scmp.ne.s32.totalorder %s693_s1, %s335_s27  ;;  %p339_p1 = scmp.lt.u32.totalorder %s335_s27, %s693_s1 }
   0x9   :  { %p341_p2 = pnand %p339_p1, %p336_p0 }
   0xb   :  { %344 = shalt.err (!%p341_p2)
}
   0xc   :  { %s345_s8 = scalar_lea.vmem %s35_s22, 1024  ;;  %p350_p4 = scmp.lt.s32.totalorder %s35_s22, %s35_s22 }
   0xd   :  { %p346_p3 = scmp.ne.s32.totalorder %s35_s22, %s345_s8  ;;  %p351_p5 = scmp.lt.s32.totalorder %s345_s8, %s345_s8 }
   0xf   :  { %p352_p6 = por %p351_p5, %p350_p4 }
  0x11   :  { %p353_p7 = pnand %p352_p6, %p346_p3 }
  0x13   :  { %356 = shalt.err (!%p353_p7)
}
  0x14   :  { %s501_s9 = smov 512   ;;  %s502_s10 = smov 32  }
  0x15   :  { %40 = dma.hbm_to_vmem [thread:$0]  %s693_s1, 1024, %s35_s22, [#allocation6], %s501_s9, %s501_s9, %s502_s10  }
  0x16   :  { %s357_s15 = scalar_lea.hbm %s695_s3, 1024 }
  0x17   :  { %p358_p8 = scmp.ne.s32.totalorder %s695_s3, %s357_s15  ;;  %p361_p9 = scmp.lt.u32.totalorder %s357_s15, %s695_s3 }
  0x19   :  { %p363_p10 = pnand %p361_p9, %p358_p8 }
  0x1b   :  { %366 = shalt.err (!%p363_p10)
}
  0x1c   :  { %s367_s20 = scalar_lea.vmem %s543_s24, 1024  ;;  %p372_p12 = scmp.lt.s32.totalorder %s543_s24, %s543_s24 }
  0x1d   :  { %p368_p11 = scmp.ne.s32.totalorder %s543_s24, %s367_s20  ;;  %p373_p13 = scmp.lt.s32.totalorder %s367_s20, %s367_s20 }
  0x1f   :  { %p374_p0 = por %p373_p13, %p372_p12 }
  0x21   :  { %p375_p1 = pnand %p374_p0, %p368_p11 }
  0x23   :  { %378 = shalt.err (!%p375_p1)
}
  0x24   :  { %64 = dma.hbm_to_vmem [thread:$0]  %s695_s3, 1024, %s543_s24, [#allocation9], %s501_s9, %s501_s9, %s502_s10  }
  0x25   :  { %s503_s22 = smov [#allocation2]   ;;  %s504_s25 = smov [#allocation7]  }
  0x26   :  { %s22_s23 = sshll.u32 %s503_s22, 4  ;;  %s46_s26 = sshll.u32 %s504_s25, 4  ;;  %s23_s23 = int_to_ptr.vmem [resolvable:$true] %s22_s23  ;;  %s580_s26 = int_to_ptr.vmem [resolvable:$true] %s46_s26 }
  0x27   :  { %s379_s29 = scalar_lea.hbm %s692_s0, 1024 }
  0x28   :  { %p380_p2 = scmp.ne.s32.totalorder %s692_s0, %s379_s29  ;;  %p383_p3 = scmp.lt.u32.totalorder %s379_s29, %s692_s0 }
  0x2a   :  { %p385_p4 = pnand %p383_p3, %p380_p2 }
  0x2c   :  { %388 = shalt.err (!%p385_p4)
}
  0x2d   :  { %s389_s3 = scalar_lea.vmem %s23_s23, 1024  ;;  %p394_p6 = scmp.lt.s32.totalorder %s23_s23, %s23_s23 }
  0x2e   :  { %p390_p5 = scmp.ne.s32.totalorder %s23_s23, %s389_s3  ;;  %p395_p7 = scmp.lt.s32.totalorder %s389_s3, %s389_s3 }
  0x30   :  { %p396_p8 = por %p395_p7, %p394_p6 }
  0x32   :  { %p397_p9 = pnand %p396_p8, %p390_p5 }
  0x34   :  { %400 = shalt.err (!%p397_p9)
}
  0x35   :  { %28 = dma.hbm_to_vmem [thread:$0]  %s692_s0, 1024, %s23_s23, [#allocation3], %s501_s9, %s501_s9, %s502_s10  }
  0x36   :  { %s401_s15 = scalar_lea.hbm %s694_s2, 1024 }
  0x37   :  { %p402_p10 = scmp.ne.s32.totalorder %s694_s2, %s401_s15  ;;  %p405_p11 = scmp.lt.u32.totalorder %s401_s15, %s694_s2 }
  0x39   :  { %p407_p12 = pnand %p405_p11, %p402_p10 }
  0x3b   :  { %410 = shalt.err (!%p407_p12)
}
  0x3c   :  { %s411_s20 = scalar_lea.vmem %s580_s26, 1024  ;;  %p416_p0 = scmp.lt.s32.totalorder %s580_s26, %s580_s26 }
  0x3d   :  { %p412_p13 = scmp.ne.s32.totalorder %s580_s26, %s411_s20  ;;  %p417_p1 = scmp.lt.s32.totalorder %s411_s20, %s411_s20 }
  0x3f   :  { %p418_p2 = por %p417_p1, %p416_p0 }
  0x41   :  { %p419_p3 = pnand %p418_p2, %p412_p13 }
  0x43   :  { %422 = shalt.err (!%p419_p3)
}
  0x44   :  { %52 = dma.hbm_to_vmem [thread:$0]  %s694_s2, 1024, %s580_s26, [#allocation6], %s501_s9, %s501_s9, %s502_s10  }
  0x45   :  { %s505_s21 = smov [#allocation10]   ;;  %s423_s27 = scalar_lea.hbm %s696_s4, 1024 }
  0x46   :  { %s70_s22 = sshll.u32 %s505_s21, 4  ;;  %p424_p4 = scmp.ne.s32.totalorder %s696_s4, %s423_s27  ;;  %s71_s22 = int_to_ptr.vmem [resolvable:$true] %s70_s22 }
  0x47   :  { %p427_p5 = scmp.lt.u32.totalorder %s423_s27, %s696_s4 }
  0x49   :  { %p429_p6 = pnand %p427_p5, %p424_p4 }
  0x4b   :  { %432 = shalt.err (!%p429_p6)
}
  0x4c   :  { %s433_s8 = scalar_lea.vmem %s71_s22, 1024  ;;  %p438_p8 = scmp.lt.s32.totalorder %s71_s22, %s71_s22 }
  0x4d   :  { %p434_p7 = scmp.ne.s32.totalorder %s71_s22, %s433_s8  ;;  %p439_p9 = scmp.lt.s32.totalorder %s433_s8, %s433_s8 }
  0x4f   :  { %p440_p10 = por %p439_p9, %p438_p8 }
  0x51   :  { %p441_p11 = pnand %p440_p10, %p434_p7 }
  0x53   :  { %444 = shalt.err (!%p441_p11)
}
  0x54   :  { %76 = dma.hbm_to_vmem [thread:$0]  %s696_s4, 1024, %s71_s22, [#allocation9], %s501_s9, %s501_s9, %s502_s10  }
  0x55   :  { %489 = dma.done.wait [#allocation3], 1024  }
  0x56   :  { %490 = vsyncadd [#allocation3], 4294966272 }
  0x57   :  { %491 = dma.done.wait [#allocation6], 2048  }
  0x58   :  { %492 = vsyncadd [#allocation6], 4294965248 }
  0x59   :  { %493 = dma.done.wait [#allocation9], 2048  }
  0x5a   :  { %494 = vsyncadd [#allocation9], 4294965248  ;;  %v95_v0 = vld [vmem:[#allocation2] sm:$0xff]  ;;  %v632_v13 = vld [vmem:[#allocation2 + $0x8] sm:$0xff]  ;;  %s506_s4 = smov [#allocation12]   ;;  %s507_s10 = smov [#allocation11]  }
  0x5b   :  { %v107_v1 = vld [vmem:[#allocation7] sm:$0xff]  ;;  %v302_v4 = vadd.f32 -1.0, %v95_v0  ;;  %v108_v16 = vld [vmem:[#allocation7 + $0x8] sm:$0xff]  ;;  %v303_v19 = vadd.f32 -1.0, %v632_v13  ;;  %v640_v30 = vld [vmem:[#allocation2 + $0x10] sm:$0xff]  ;;  %s282_s9 = sshll.u32 %s506_s4, 4  ;;  %s283_s9 = int_to_ptr.vmem [resolvable:$true] %s282_s9 }
  0x5c   :  { %v113_v2 = vld [vmem:[#allocation8] sm:$0xff]  ;;  %v114_v17 = vld [vmem:[#allocation8 + $0x8] sm:$0xff]  ;;  %v109_v32 = vld [vmem:[#allocation7 + $0x10] sm:$0xff]  ;;  %v304_v34 = vadd.f32 -1.0, %v640_v30  ;;  %s272_s11 = sshll.u32 %s507_s10, 4  ;;  %s445_s3 = scalar_lea.vmem %s283_s9, 512  ;;  %s273_s11 = int_to_ptr.vmem [resolvable:$true] %s272_s11 }
  0x5d   :  { %v119_v3 = vld [vmem:[#allocation10] sm:$0xff]  ;;  %v155_v10 = vmul.f32 2.0, %v113_v2  ;;  %v135_v11 = vmul.f32 %v302_v4, %v113_v2  ;;  %v120_v18 = vld [vmem:[#allocation10 + $0x8] sm:$0xff]  ;;  %v136_v26 = vmul.f32 %v303_v19, %v114_v17  ;;  %v115_v33 = vld [vmem:[#allocation8 + $0x10] sm:$0xff]  ;;  %p446_p12 = scmp.ne.s32.totalorder %s283_s9, %s445_s3  ;;  %p450_p13 = scmp.lt.s32.totalorder %s283_s9, %s283_s9 }
  0x5e   :  { %v178_v5 = vld [vmem:[#allocation2 + $0x20] sm:$0xff]  ;;  %v123_v6 = vsub.f32 %v119_v3, %v107_v1  ;;  %v635_v21 = vld [vmem:[#allocation2 + $0x28] sm:$0xff]  ;;  %v637_v25 = vsub.f32 %v120_v18, %v108_v16  ;;  %v121_v37 = vld [vmem:[#allocation10 + $0x10] sm:$0xff]  ;;  %v137_v43 = vmul.f32 %v304_v34, %v115_v33  ;;  %p451_p0 = scmp.lt.s32.totalorder %s445_s3, %s445_s3 }
  0x5f   :  { %v190_v7 = vld [vmem:[#allocation7 + $0x20] sm:$0xff]  ;;  %v306_v9 = vadd.f32 -1.0, %v178_v5  ;;  %319 = vrcp.f32 %v135_v11  ;;  %v191_v22 = vld [vmem:[#allocation7 + $0x28] sm:$0xff]  ;;  %v159_v24 = vadd.f32 %v155_v10, %v95_v0  ;;  %v307_v29 = vadd.f32 -1.0, %v635_v21  ;;  %v645_v38 = vld [vmem:[#allocation2 + $0x30] sm:$0xff] }
  0x60   :  { %v196_v8 = vld [vmem:[#allocation8 + $0x20] sm:$0xff]  ;;  %v151_v23 = vand.u32 2147483647, %v123_v6  ;;  %v197_v27 = vld [vmem:[#allocation8 + $0x28] sm:$0xff]  ;;  %v127_v41 = vmul.f32 %v123_v6, %v123_v6  ;;  %v125_v42 = vsub.f32 %v121_v37, %v109_v32  ;;  %v192_v44 = vld [vmem:[#allocation7 + $0x30] sm:$0xff]  ;;  %v308_v47 = vadd.f32 -1.0, %v645_v38  ;;  %p452_p1 = por %p451_p0, %p450_p13 }
  0x61   :  { %v202_v12 = vld [vmem:[#allocation10 + $0x20] sm:$0xff]  ;;  %v218_v15 = vmul.f32 %v306_v9, %v196_v8  ;;  %v238_v20 = vmul.f32 2.0, %v196_v8  ;;  %v203_v28 = vld [vmem:[#allocation10 + $0x28] sm:$0xff]  ;;  %v219_v36 = vmul.f32 %v307_v29, %v197_v27  ;;  %v198_v45 = vld [vmem:[#allocation8 + $0x30] sm:$0xff]  ;;  %v650_v49 = vmul.f32 %v637_v25, %v637_v25 }
  0x62   :  { %v206_v14 = vsub.f32 %v202_v12, %v190_v7  ;;  %v642_v31 = vsub.f32 %v203_v28, %v191_v22  ;;  %v163_v35 = vmul.f32 %v159_v24, %v151_v23  ;;  %v204_v46 = vld [vmem:[#allocation10 + $0x30] sm:$0xff]  ;;  %v652_v50 = vld [vmem:[#allocation2 + $0x18] sm:$0xff]  ;;  %v220_v54 = vmul.f32 %v308_v47, %v198_v45  ;;  %v101_v0 = vld [vmem:[#allocation5] sm:$0xff]  ;;  %p453_p2 = pnand %p452_p1, %p446_p12 }
  0x63   :  { %321 = vrcp.f32 %v218_v15  ;;  %v242_v40 = vadd.f32 %v238_v20, %v178_v5  ;;  %v110_v51 = vld [vmem:[#allocation7 + $0x18] sm:$0xff]  ;;  %v305_v57 = vadd.f32 -1.0, %v652_v50  ;;  %v208_v59 = vsub.f32 %v204_v46, %v192_v44  ;;  %v184_v6 = vld [vmem:[#allocation5 + $0x20] sm:$0xff]  ;;  %v102_v19 = vld [vmem:[#allocation5 + $0x8] sm:$0xff] }
  0x64   :  { %323 = vrcp.f32 %v136_v26  ;;  %v234_v39 = vand.u32 2147483647, %v206_v14  ;;  %v210_v48 = vmul.f32 %v206_v14, %v206_v14  ;;  %v656_v53 = vmul.f32 %v642_v31, %v642_v31  ;;  %v116_v55 = vld [vmem:[#allocation8 + $0x18] sm:$0xff]  ;;  %v185_v28 = vld [vmem:[#allocation5 + $0x28] sm:$0xff]  ;;  %v103_v34 = vld [vmem:[#allocation5 + $0x10] sm:$0xff] }
  0x65   :  { %325 = vrcp.f32 %v219_v36  ;;  %v122_v56 = vld [vmem:[#allocation10 + $0x18] sm:$0xff]  ;;  %v152_v63 = vand.u32 2147483647, %v637_v25  ;;  %v129_v1 = vmul.f32 %v125_v42, %v125_v42  ;;  %v138_v2 = vmul.f32 %v305_v57, %v116_v55  ;;  %v186_v46 = vld [vmem:[#allocation5 + $0x30] sm:$0xff] }
  0x66   :  { %v246_v52 = vmul.f32 %v242_v40, %v234_v39  ;;  %327 = vrcp.f32 %v137_v43  ;;  %v181_v58 = vld [vmem:[#allocation2 + $0x38] sm:$0xff]  ;;  %v156_v5 = vmul.f32 2.0, %v114_v17  ;;  %v126_v7 = vsub.f32 %v122_v56, %v110_v51 }
  0x67   :  { %v199_v60 = vld [vmem:[#allocation8 + $0x38] sm:$0xff]  ;;  %v309_v61 = vadd.f32 -1.0, %v181_v58  ;;  %329 = vrcp.f32 %v220_v54  ;;  %v235_v9 = vand.u32 2147483647, %v642_v31  ;;  %v239_v10 = vmul.f32 2.0, %v197_v27 }
  0x68   :  { %v254_v62 = vadd.f32 %v246_v52, %v163_v35  ;;  %v193_v3 = vld [vmem:[#allocation7 + $0x38] sm:$0xff]  ;;  %331 = vrcp.f32 %v138_v2  ;;  %v160_v12 = vadd.f32 %v156_v5, %v632_v13  ;;  %v153_v14 = vand.u32 2147483647, %v125_v42 }
  0x69   :  { %v205_v4 = vld [vmem:[#allocation10 + $0x38] sm:$0xff]  ;;  %v221_v8 = vmul.f32 %v309_v61, %v199_v60  ;;  %v320_v11 = vpop.eup %319  ;;  %v157_v15 = vmul.f32 2.0, %v115_v33  ;;  %v243_v17 = vadd.f32 %v239_v10, %v635_v21  ;;  %v236_v25 = vand.u32 2147483647, %v208_v59 }
  0x6a   :  { %262 = vst [vmem:[#allocation12] sm:$0xff] %v254_v62  ;;  %v143_v18 = vmul.f32 %v320_v11, %v101_v0  ;;  %v209_v20 = vsub.f32 %v205_v4, %v193_v3  ;;  %v164_v23 = vmul.f32 %v160_v12, %v152_v63  ;;  %v240_v31 = vmul.f32 2.0, %v198_v45  ;;  %v187_v61 = vld [vmem:[#allocation5 + $0x38] sm:$0xff] }
  0x6b   :  { %333 = vrcp.f32 %v221_v8  ;;  %v161_v24 = vadd.f32 %v157_v15, %v640_v30  ;;  %v247_v29 = vmul.f32 %v243_v17, %v235_v9  ;;  %v154_v13 = vand.u32 2147483647, %v126_v7 }
  0x6c   :  { %v147_v27 = vadd.f32 %v143_v18, %v127_v41  ;;  %v158_v36 = vmul.f32 2.0, %v116_v55  ;;  %v244_v21 = vadd.f32 %v240_v31, %v645_v38  ;;  %v237_v40 = vand.u32 2147483647, %v209_v20  ;;  %v104_v38 = vld [vmem:[#allocation5 + $0x18] sm:$0xff] }
  0x6d   :  { %v322_v16 = vpop.eup %321  ;;  %v165_v35 = vmul.f32 %v161_v24, %v153_v14  ;;  %v255_v39 = vadd.f32 %v247_v29, %v164_v23  ;;  %v241_v42 = vmul.f32 2.0, %v199_v60  ;;  %v130_v56 = vmul.f32 %v126_v7, %v126_v7 }
  0x6e   :  { %v226_v22 = vmul.f32 %v322_v16, %v184_v6  ;;  %v324_v26 = vpop.eup %323  ;;  %v162_v45 = vadd.f32 %v158_v36, %v652_v50  ;;  %v248_v51 = vmul.f32 %v244_v21, %v236_v25 }
  0x6f   :  { %v144_v33 = vmul.f32 %v324_v26, %v102_v19  ;;  %v326_v37 = vpop.eup %325  ;;  %263 = vst [vmem:[#allocation12 + $0x8] sm:$0xff] %v255_v39  ;;  %v245_v52 = vadd.f32 %v241_v42, %v181_v58 }
  0x70   :  { %v230_v32 = vadd.f32 %v226_v22, %v210_v48  ;;  %v328_v43 = vpop.eup %327  ;;  %v227_v41 = vmul.f32 %v326_v37, %v185_v28  ;;  %v212_v48 = vmul.f32 %v208_v59, %v208_v59  ;;  %v166_v57 = vmul.f32 %v162_v45, %v154_v13 }
  0x71   :  { %v148_v44 = vadd.f32 %v144_v33, %v650_v49  ;;  %v145_v47 = vmul.f32 %v328_v43, %v103_v34  ;;  %v330_v54 = vpop.eup %329  ;;  %v256_v62 = vadd.f32 %v248_v51, %v165_v35  ;;  %v249_v63 = vmul.f32 %v245_v52, %v237_v40 }
  0x72   :  { %v250_v30 = vadd.f32 %v230_v32, %v147_v27  ;;  %v231_v55 = vadd.f32 %v227_v41, %v656_v53  ;;  %v228_v49 = vmul.f32 %v330_v54, %v186_v46  ;;  %v332_v50 = vpop.eup %331  ;;  %v213_v59 = vmul.f32 %v209_v20, %v209_v20 }
  0x73   :  { %v149_v60 = vadd.f32 %v145_v47, %v129_v1  ;;  %v146_v58 = vmul.f32 %v332_v50, %v104_v38  ;;  %264 = vst [vmem:[#allocation12 + $0x10] sm:$0xff] %v256_v62  ;;  %v257_v4 = vadd.f32 %v249_v63, %v166_v57 }
  0x74   :  { %258 = vst [vmem:[#allocation11] sm:$0xff] %v250_v30  ;;  %v251_v0 = vadd.f32 %v231_v55, %v148_v44  ;;  %v232_v3 = vadd.f32 %v228_v49, %v212_v48 }
  0x75   :  { %v334_v2 = vpop.eup %333  ;;  %v150_v6 = vadd.f32 %v146_v58, %v130_v56  ;;  %265 = vst [vmem:[#allocation12 + $0x18] sm:$0xff] %v257_v4 }
  0x76   :  { %259 = vst [vmem:[#allocation11 + $0x8] sm:$0xff] %v251_v0  ;;  %v229_v53 = vmul.f32 %v334_v2, %v187_v61  ;;  %v252_v5 = vadd.f32 %v232_v3, %v149_v60 }
  0x78   :  { %v233_v1 = vadd.f32 %v229_v53, %v213_v59 }
  0x79   :  { %456 = shalt.err (!%p453_p2)
}
  0x7a   :  { %s457_s13 = scalar_lea.hbm %s698_s6, 512 }
  0x7b   :  { %p458_p3 = scmp.ne.s32.totalorder %s698_s6, %s457_s13  ;;  %p461_p4 = scmp.lt.u32.totalorder %s457_s13, %s698_s6 }
  0x7d   :  { %p463_p5 = pnand %p461_p4, %p458_p3 }
  0x7f   :  { %466 = shalt.err (!%p463_p5)
}
  0x80   :  { %285 = dma.vmem_to_hbm [thread:$0]  %s283_s9, 512, %s698_s6, [#allocation13]   ;;  %260 = vst [vmem:[#allocation11 + $0x10] sm:$0xff] %v252_v5  ;;  %v253_v7 = vadd.f32 %v233_v1, %v150_v6 }
  0x81   :  { %s467_s20 = scalar_lea.vmem %s273_s11, 512  ;;  %p472_p7 = scmp.lt.s32.totalorder %s273_s11, %s273_s11 }
  0x82   :  { %261 = vst [vmem:[#allocation11 + $0x18] sm:$0xff] %v253_v7  ;;  %p468_p6 = scmp.ne.s32.totalorder %s273_s11, %s467_s20  ;;  %p473_p8 = scmp.lt.s32.totalorder %s467_s20, %s467_s20 }
  0x84   :  { %p474_p9 = por %p473_p8, %p472_p7 }
  0x86   :  { %p475_p10 = pnand %p474_p9, %p468_p6 }
  0x88   :  { %478 = shalt.err (!%p475_p10)
}
  0x89   :  { %s479_s21 = scalar_lea.hbm %s697_s5, 512 }
  0x8a   :  { %p480_p11 = scmp.ne.s32.totalorder %s697_s5, %s479_s21  ;;  %p483_p12 = scmp.lt.u32.totalorder %s479_s21, %s697_s5 }
  0x8c   :  { %p485_p13 = pnand %p483_p12, %p480_p11 }
  0x8e   :  { %488 = shalt.err (!%p485_p13)
}
  0x8f   :  { %275 = dma.vmem_to_hbm [thread:$0]  %s273_s11, 512, %s697_s5, [#allocation4]  }
  0x90   :  { %495 = dma.done.wait [#allocation4], 512  }
  0x91   :  { %496 = vsyncadd [#allocation4], 4294966784 }
  0x92   :  { %497 = dma.done.wait [#allocation13], 512  }
  0x93   :  { %498 = vsyncadd [#allocation13], 4294966784 }
  0x94   :  { %292 = vsyncpa [#allocation3], 1 }
  0x95   :  { %293 = vsyncpa [#allocation6], 1 }
  0x96   :  { %294 = vsyncpa [#allocation9], 1 }
  0x97   :  { %295 = vsyncpa [#allocation4], 1 }
  0x98   :  { %296 = vsyncpa [#allocation13], 1 }

</bundles_post_ra>
